<compile_context>
chip_gen: v6e
topology: v6e:2x2x1
jax: 0.10.0
libtpu: 0.0.40
codegen_flags: <defaults>
</compile_context>

<pallas_src>
import jax
import jax.numpy as jnp
from jax.experimental import pallas as pl
from jax.experimental.pallas import tpu as pltpu

_SUBLANE = 8
_LANE = 128
_VREG_ELEMS = _SUBLANE * _LANE          # 1024 elements per (8,128) vreg tile
_MAX_COL_TILES = 64                     # cap last dim at 64*128 = 8192 lanes
_PER_BUFFER_BUDGET_BYTES = 2 * 1024 * 1024  # keeps 2x(in+out) buffers <= 8 MiB


def _relu_kernel(x_ref, o_ref):
    # Elementwise hot path: func(x) = max(x, 0). Single VPU vmax per vreg;
    # the kernel is bound entirely by DMA / vld / vst, not compute.
    o_ref[...] = jnp.maximum(x_ref[...], 0)


def _largest_divisor_at_most(n: int, cap: int) -> int:
    cap = max(1, min(n, cap))
    for d in range(cap, 0, -1):
        if n % d == 0:
            return d
    return 1


def lambda_forward(x: jax.Array) -> jax.Array:
    """Applies Lambda(func=relu) to an arbitrary-shape input via a Pallas TPU kernel."""
    orig_shape = x.shape
    dtype = x.dtype
    itemsize = jnp.dtype(dtype).itemsize
    total = int(x.size)

    # --- Lane-dense repacking (wrapper-side layout plumbing, no compute) -----
    flat = x.reshape(-1)
    pad = (-total) % _VREG_ELEMS
    if pad:
        flat = jnp.pad(flat, (0, pad))
    padded = total + pad
    n_vregs = padded // _VREG_ELEMS

    # Factor the vreg count into (row_tiles x col_tiles): make the last dim as
    # wide a multiple of 128 as possible (unmasked vst), stack the rest along
    # the sublane axis.
    col_tiles = _largest_divisor_at_most(n_vregs, _MAX_COL_TILES)
    row_tiles = n_vregs // col_tiles
    cols = col_tiles * _LANE
    rows = row_tiles * _SUBLANE
    x2d = flat.reshape(rows, cols)

    # --- Block selection: biggest row-slab within the per-buffer VMEM budget --
    row_bytes = _SUBLANE * cols * itemsize
    max_row_tiles_per_block = max(1, _PER_BUFFER_BUDGET_BYTES // row_bytes)
    block_row_tiles = _largest_divisor_at_most(row_tiles, max_row_tiles_per_block)
    block_rows = block_row_tiles * _SUBLANE
    grid = (rows // block_rows,)  # == (1,) for small inputs -> single block

    out2d = pl.pallas_call(
        _relu_kernel,
        out_shape=jax.ShapeDtypeStruct((rows, cols), dtype),
        grid=grid,
        in_specs=[pl.BlockSpec((block_rows, cols), lambda i: (i, 0))],
        out_specs=pl.BlockSpec((block_rows, cols), lambda i: (i, 0)),
        compiler_params=pltpu.CompilerParams(
            dimension_semantics=("parallel",),
        ),
    )(x2d)

    out_flat = out2d.reshape(-1)
    if pad:
        out_flat = out_flat[:total]
    return out_flat.reshape(orig_shape)


if __name__ == "__main__":
    key = jax.random.PRNGKey(0)
    x = jax.random.normal(key, (2, 4, 16, 16), dtype=jnp.float32)  # NCHW

    y = lambda_forward(x)
    jax.block_until_ready(y)

    # Reference check against plain-JAX func(x) = relu(x)
    y_ref = jnp.maximum(x, 0.0)
    assert y.shape == x.shape and y.dtype == x.dtype
    assert jnp.allclose(y, y_ref), "mismatch vs reference"

    print("KERNEL_OK")
</pallas_src>

<mosaic_0001>
module attributes {stable_mosaic.version = 11 : i64} {
  func.func @_relu_kernel(%arg0: i32, %arg1: memref<8x256xf32, #tpu.memory_space<vmem>>, %arg2: memref<8x256xf32, #tpu.memory_space<vmem>>) attributes {dimension_semantics = [#tpu.dimension_semantics<parallel>], iteration_bounds = array<i64: 1>, scalar_prefetch = 0 : i64, scratch_operands = 0 : i64, tpu.core_type = #tpu.core_type<tc>, window_params = [{transform_indices = @transform_0, window_bounds = array<i64: 8, 256>}, {transform_indices = @transform_1, window_bounds = array<i64: 8, 256>}]} {
    %c0 = arith.constant 0 : index
    %c0_0 = arith.constant 0 : index
    %0 = vector.load %arg1[%c0, %c0_0] : memref<8x256xf32, #tpu.memory_space<vmem>>, vector<8x256xf32>
    %cst = arith.constant 0.000000e+00 : f32
    %1 = vector.broadcast %cst : f32 to vector<8x256xf32>
    %2 = arith.maximumf %0, %1 : vector<8x256xf32>
    %c0_1 = arith.constant 0 : index
    %c0_2 = arith.constant 0 : index
    %3 = vector.load %arg2[%c0_1, %c0_2] : memref<8x256xf32, #tpu.memory_space<vmem>>, vector<8x256xf32>
    tpu.vector_store %arg2[%c0_1, %c0_2], %2 {strides = array<i32>} : memref<8x256xf32, #tpu.memory_space<vmem>>, vector<8x256xf32>,
    return
  }
  func.func @transform_0(%arg0: i32) -> (i32, i32) {
    %c0_i32 = arith.constant 0 : i32
    %c0_i32_0 = arith.constant 0 : i32
    return %arg0, %c0_i32 : i32, i32
  }
  func.func @transform_1(%arg0: i32) -> (i32, i32) {
    %c0_i32 = arith.constant 0 : i32
    %c0_i32_0 = arith.constant 0 : i32
    return %arg0, %c0_i32 : i32, i32
  }
}

</mosaic_0001>

<bundles_post_ra>
// kernel: tpu_custom_call.1
= control target key start
LH: loop header
LB: loop body
LE: loop exit
PB: predicated region body
PF: predicated region fallthrough
CT: control target
= control target key end

     0   :  { %6 = vsyncpa [#allocation3], 0  ;;  %s106_s0 = inlined_call_operand.hbm [shape: f32[8,256], index: 0, kind: input, shape index: {}]   ;;  %s107_s1 = inlined_call_operand.hbm [shape: f32[8,256], index: 1, kind: output, shape index: {}]  }
   0x1   :  { %7 = vsyncpa [#allocation4], 0  ;;  %s88_s6 = smov [#allocation2]  }
   0x2   :  { %s14_s7 = sshll.u32 %s88_s6, 4  ;;  %s15_s7 = int_to_ptr.vmem [resolvable:$true] %s14_s7 }
   0x3   :  { %s52_s8 = scalar_lea.vmem %s15_s7, 256  ;;  %p57_p1 = scmp.lt.s32.totalorder %s15_s7, %s15_s7 }
   0x4   :  { %p53_p0 = scmp.ne.s32.totalorder %s15_s7, %s52_s8  ;;  %p58_p2 = scmp.lt.s32.totalorder %s52_s8, %s52_s8 }
   0x6   :  { %p59_p3 = por %p58_p2, %p57_p1 }
   0x8   :  { %p60_p4 = pnand %p59_p3, %p53_p0 }
   0xa   :  { %63 = shalt.err (!%p60_p4)
}
   0xb   :  { %17 = dma.hbm_to_vmem [thread:$0]  %s106_s0, 256, %s15_s7, [#allocation3]  }
   0xc   :  { %84 = dma.done.wait [#allocation3], 256  }
   0xd   :  { %85 = vsyncadd [#allocation3], 4294967040  ;;  %s89_s11 = smov [#allocation5]   ;;  %v21_v0 = vld [vmem:[#allocation2] sm:$0xff]  ;;  %v22_v1 = vld [vmem:[#allocation2 + $0x8] sm:$0xff] }
   0xe   :  { %s33_s12 = sshll.u32 %s89_s11, 4  ;;  %v23_v2 = vmax.f32 %v21_v0, 0.0  ;;  %v24_v3 = vmax.f32 %v22_v1, 0.0  ;;  %s34_s12 = int_to_ptr.vmem [resolvable:$true] %s33_s12 }
   0xf   :  { %s64_s13 = scalar_lea.vmem %s34_s12, 256  ;;  %p69_p6 = scmp.lt.s32.totalorder %s34_s12, %s34_s12 }
  0x10   :  { %25 = vst [vmem:[#allocation5] sm:$0xff] %v23_v2  ;;  %26 = vst [vmem:[#allocation5 + $0x8] sm:$0xff] %v24_v3  ;;  %p65_p5 = scmp.ne.s32.totalorder %s34_s12, %s64_s13  ;;  %p70_p7 = scmp.lt.s32.totalorder %s64_s13, %s64_s13 }
  0x12   :  { %p71_p8 = por %p70_p7, %p69_p6 }
  0x14   :  { %p72_p9 = pnand %p71_p8, %p65_p5 }
  0x16   :  { %75 = shalt.err (!%p72_p9)
}
  0x17   :  { %36 = dma.vmem_to_hbm [thread:$0]  %s34_s12, 256, %s107_s1, [#allocation4]  }
  0x18   :  { %86 = dma.done.wait [#allocation4], 256  }
  0x19   :  { %87 = vsyncadd [#allocation4], 4294967040 }
  0x1a   :  { %40 = vsyncpa [#allocation3], 1 }
  0x1b   :  { %41 = vsyncpa [#allocation4], 1 }

</bundles_post_ra>
